<compile_context>
chip_gen: v7x
topology: tpu7x:2x2x1
jax: 0.10.0
libtpu: 0.0.40
codegen_flags: <defaults>
</compile_context>

<pallas_src>
import functools
from typing import NamedTuple

import jax
import jax.numpy as jnp
from jax.experimental import pallas as pl
from jax.experimental.pallas import tpu as pltpu


def _round_up(n, m):
    return ((n + m - 1) // m) * m


def _pad_axis(a, axis, target):
    pad = target - a.shape[axis]
    if pad <= 0:
        return a
    widths = [(0, 0)] * a.ndim
    widths[axis] = (0, pad)
    return jnp.pad(a, widths)


# Kernel gate order is [i, f, o, g] (PyTorch stores rows as [i, f, g, o]), so
# one sigmoid covers the contiguous 3*Hp lane block and tanh only the last Hp.
_GATE_PERM = (0, 1, 3, 2)


class PackedLSTMDecoderParams(NamedTuple):
    w_ihT: jax.Array      # (Ip, 4*Hp) bf16
    w_hhT: jax.Array      # (Hp, 4*Hp) bf16
    bias: jax.Array       # (1, 4*Hp) f32   (b_ih + b_hh, gate-reordered)
    w_linT: jax.Array     # (Hp, Op) bf16
    b_lin: jax.Array      # (1, Op) f32
    hidden_size: int      # H (unpadded)
    output_size: int      # O (unpadded)


def pack_lstm_decoder_params(w_ih, w_hh, b_ih, b_hh, w_lin, b_lin):
    """One-time weight packing. Call once, reuse the result for every decode step."""
    H = w_hh.shape[1]
    I = w_ih.shape[1]
    O = w_lin.shape[0]
    Ip = _round_up(I, 128)   # lane pad of the input-projection contraction dim
    Hp = _round_up(H, 128)   # per-gate lane pad -> vreg-aligned gate slices
    Op = _round_up(O, 128)   # lane-dense prediction store
    perm = jnp.array(_GATE_PERM)

    # Pad each gate block separately so gate k occupies lanes [k*Hp, (k+1)*Hp).
    w_ih4 = _pad_axis(_pad_axis(w_ih.reshape(4, H, I)[perm], 1, Hp), 2, Ip)   # (4,Hp,Ip)
    w_hh4 = _pad_axis(_pad_axis(w_hh.reshape(4, H, H)[perm], 1, Hp), 2, Hp)   # (4,Hp,Hp)
    b4 = _pad_axis((b_ih + b_hh).reshape(4, H)[perm], 1, Hp)                  # (4,Hp)

    w_ihT = jnp.transpose(w_ih4.reshape(4 * Hp, Ip)).astype(jnp.bfloat16)     # (Ip,4Hp)
    w_hhT = jnp.transpose(w_hh4.reshape(4 * Hp, Hp)).astype(jnp.bfloat16)     # (Hp,4Hp)
    bias = b4.reshape(1, 4 * Hp).astype(jnp.float32)

    w_linT = jnp.transpose(
        _pad_axis(_pad_axis(w_lin, 0, Op), 1, Hp)).astype(jnp.bfloat16)       # (Hp,Op)
    b_linp = _pad_axis(b_lin, 0, Op).reshape(1, Op).astype(jnp.float32)

    return PackedLSTMDecoderParams(w_ihT, w_hhT, bias, w_linT, b_linp, H, O)


def _gates_to_hc(gates, c_prev, Hp):
    """gates: (Bp, 4*Hp) f32 pre-activations in [i, f, o, g] order."""
    ifo = jax.nn.sigmoid(gates[:, :3 * Hp])     # single EUP stream over 3 gate blocks
    g = jnp.tanh(gates[:, 3 * Hp:])
    c_t = ifo[:, Hp:2 * Hp] * c_prev + ifo[:, 0:Hp] * g
    h_t = ifo[:, 2 * Hp:3 * Hp] * jnp.tanh(c_t)
    return h_t, c_t


def lstm_decoder_step_kernel(x_ref, wihT_ref, whhT_ref, b_ref, h0_ref, c0_ref,
                             wlinT_ref, blin_ref, pred_ref, hn_ref, cn_ref):
    """T == 1 fast path: no slab, no loop — one fused gate matmul + head matmul."""
    Hp = h0_ref.shape[1]
    gates = (jnp.dot(x_ref[...], wihT_ref[...], preferred_element_type=jnp.float32)
             + jnp.dot(h0_ref[...].astype(whhT_ref.dtype), whhT_ref[...],
                       preferred_element_type=jnp.float32)
             + b_ref[...])
    h_t, c_t = _gates_to_hc(gates, c0_ref[...], Hp)
    hn_ref[...] = h_t
    cn_ref[...] = c_t
    pred_ref[...] = (jnp.dot(h_t.astype(wlinT_ref.dtype), wlinT_ref[...],
                             preferred_element_type=jnp.float32)
                     + blin_ref[...])


def lstm_decoder_seq_kernel(x_ref, wihT_ref, whhT_ref, b_ref, h0_ref, c0_ref,
                            wlinT_ref, blin_ref, pred_ref, hn_ref, cn_ref,
                            gx_sc, hs_sc, *, unroll):
    """General T > 1 path: hoisted input projection, vreg-carried h/c recurrence,
    bf16 hidden-state slab, fused Linear head over all timesteps."""
    Bp, Hp = h0_ref.shape
    T = x_ref.shape[0] // Bp            # static trip count

    # Input projection for ALL timesteps in one MXU matmul: (T*Bp, Ip) @ (Ip, 4Hp).
    gx_sc[...] = (jnp.dot(x_ref[...], wihT_ref[...],
                          preferred_element_type=jnp.float32) + b_ref[...])

    def step(t, carry):
        h_bf, _h_f32, c = carry
        row = pl.multiple_of(t * Bp, Bp)          # aligned sublane offset
        gates = gx_sc[pl.ds(row, Bp), :] + jnp.dot(
            h_bf, whhT_ref[...], preferred_element_type=jnp.float32)
        h_t, c_t = _gates_to_hc(gates, c, Hp)
        h_bf_t = h_t.astype(jnp.bfloat16)         # single cast, reused next step + head
        hs_sc[pl.ds(row, Bp), :] = h_bf_t
        return (h_bf_t, h_t, c_t)

    init = (h0_ref[...].astype(jnp.bfloat16), h0_ref[...], c0_ref[...])
    _, h_last, c_last = jax.lax.fori_loop(0, T, step, init, unroll=unroll)

    hn_ref[...] = h_last                          # exact f32 final state
    cn_ref[...] = c_last
    # Fused Linear head over the whole bf16 hidden slab -> one lane-dense store.
    pred_ref[...] = (jnp.dot(hs_sc[...], wlinT_ref[...],
                             preferred_element_type=jnp.float32) + blin_ref[...])


def lstm_decoder_forward(x, h0, c0, params: PackedLSTMDecoderParams):
    """x: (T, B, I); h0/c0: (1, B, H); params: output of pack_lstm_decoder_params."""
    T, B, _I = x.shape
    H, O = params.hidden_size, params.output_size
    Ip = params.w_ihT.shape[0]
    Hp = params.w_hhT.shape[0]
    Op = params.w_linT.shape[1]
    Bp = _round_up(B, 8)

    xp = (_pad_axis(_pad_axis(x, 1, Bp), 2, Ip)
          .reshape(T * Bp, Ip).astype(jnp.bfloat16))
    # Zero padding of h0/c0 is a required invariant (padded h/c lanes stay 0).
    h0p = _pad_axis(_pad_axis(h0[0], 0, Bp), 1, Hp).astype(jnp.float32)
    c0p = _pad_axis(_pad_axis(c0[0], 0, Bp), 1, Hp).astype(jnp.float32)

    if T == 1:
        kernel = lstm_decoder_step_kernel
        scratch_shapes = ()
        pred_rows = Bp
        scratch_bytes = 0
    else:
        kernel = functools.partial(lstm_decoder_seq_kernel, unroll=min(T, 8))
        scratch_shapes = (
            pltpu.VMEM((T * Bp, 4 * Hp), jnp.float32),   # hoisted input projections
            pltpu.VMEM((T * Bp, Hp), jnp.bfloat16),      # bf16 hidden-state slab
        )
        pred_rows = T * Bp
        scratch_bytes = T * Bp * 4 * Hp * 4 + T * Bp * Hp * 2

    in_bytes = (xp.size * 2 + params.w_ihT.size * 2 + params.w_hhT.size * 2
                + params.bias.size * 4 + h0p.size * 4 + c0p.size * 4
                + params.w_linT.size * 2 + params.b_lin.size * 4)
    out_bytes = pred_rows * Op * 4 + 2 * Bp * Hp * 4
    vmem_needed = in_bytes + out_bytes + scratch_bytes
    # TODO(synk): for long sequences (vmem_needed beyond ~60 MiB, T in the
    # thousands) switch to a T-tiled grid with BlockSpec-pipelined x/pred tiles
    # instead of raising the limit (v7x only has 64 MiB physical VMEM).
    vmem_limit = int(min(max(2 * vmem_needed, 32 * 1024 * 1024),
                         60 * 1024 * 1024))

    vmem = pl.BlockSpec(memory_space=pltpu.MemorySpace.VMEM)
    pred_p, hn_p, cn_p = pl.pallas_call(
        kernel,
        out_shape=(
            jax.ShapeDtypeStruct((pred_rows, Op), jnp.float32),   # prediction (padded)
            jax.ShapeDtypeStruct((Bp, Hp), jnp.float32),          # h_n (padded)
            jax.ShapeDtypeStruct((Bp, Hp), jnp.float32),          # c_n (padded)
        ),
        in_specs=[vmem] * 8,
        out_specs=(vmem, vmem, vmem),
        scratch_shapes=scratch_shapes,
        compiler_params=pltpu.CompilerParams(vmem_limit_bytes=vmem_limit),
    )(xp, params.w_ihT, params.w_hhT, params.bias, h0p, c0p,
      params.w_linT, params.b_lin)

    pred = pred_p.reshape(T, Bp, Op)[:, :B, :O]
    if T == 1:
        pred = jnp.squeeze(pred, axis=0)       # mirrors lstm_out.squeeze(0)
    h_n = hn_p[:B, :H][None]
    c_n = cn_p[:B, :H][None]
    return pred, (h_n, c_n)


def lstm_decoder_reference(x, h0, c0, w_ih, w_hh, b_ih, b_hh, w_lin, b_lin):
    """Pure-JAX f32 reference (same math as torch.nn.LSTM + nn.Linear)."""
    T, B, I = x.shape
    H = w_hh.shape[1]
    bias = b_ih + b_hh

    def step(carry, x_t):
        h, c = carry
        gates = x_t @ w_ih.T + h @ w_hh.T + bias
        i = jax.nn.sigmoid(gates[:, 0 * H:1 * H])
        f = jax.nn.sigmoid(gates[:, 1 * H:2 * H])
        g = jnp.tanh(gates[:, 2 * H:3 * H])
        o = jax.nn.sigmoid(gates[:, 3 * H:4 * H])
        c_new = f * c + i * g
        h_new = o * jnp.tanh(c_new)
        return (h_new, c_new), h_new

    (h_T, c_T), outs = jax.lax.scan(step, (h0[0], c0[0]), x)
    pred = outs @ w_lin.T + b_lin          # (T, B, O)
    if T == 1:
        pred = jnp.squeeze(pred, axis=0)
    return pred, (h_T[None], c_T[None])


if __name__ == "__main__":
    # Shapes implied by the module: single decoder step (seq_len=1),
    # input_size=32, hidden_size=64, output_size=1, num_layers=1, batch=2.
    seq_len, batch = 1, 2
    input_size, hidden_size, output_size = 32, 64, 1

    key = jax.random.PRNGKey(0)
    keys = jax.random.split(key, 10)
    scale = 1.0 / jnp.sqrt(hidden_size)

    x = jax.random.normal(keys[0], (seq_len, batch, input_size), jnp.float32)
    h0 = jax.random.normal(keys[1], (1, batch, hidden_size), jnp.float32) * 0.5
    c0 = jax.random.normal(keys[2], (1, batch, hidden_size), jnp.float32) * 0.5
    w_ih = jax.random.uniform(keys[3], (4 * hidden_size, input_size), jnp.float32,
                              -scale, scale)
    w_hh = jax.random.uniform(keys[4], (4 * hidden_size, hidden_size), jnp.float32,
                              -scale, scale)
    b_ih = jax.random.uniform(keys[5], (4 * hidden_size,), jnp.float32, -scale, scale)
    b_hh = jax.random.uniform(keys[6], (4 * hidden_size,), jnp.float32, -scale, scale)
    w_lin = jax.random.uniform(keys[7], (output_size, hidden_size), jnp.float32,
                               -scale, scale)
    b_lin = jax.random.uniform(keys[8], (output_size,), jnp.float32, -scale, scale)

    # One-time packing (cache and reuse across decode steps).
    packed = pack_lstm_decoder_params(w_ih, w_hh, b_ih, b_hh, w_lin, b_lin)
    jax.block_until_ready((packed.w_ihT, packed.w_hhT, packed.bias,
                           packed.w_linT, packed.b_lin))

    # --- T == 1 fast path (the module's configuration) ---
    pred, (h_n, c_n) = lstm_decoder_forward(x, h0, c0, packed)
    jax.block_until_ready((pred, h_n, c_n))

    ref_pred, (ref_h, ref_c) = lstm_decoder_reference(x, h0, c0, w_ih, w_hh,
                                                      b_ih, b_hh, w_lin, b_lin)
    assert pred.shape == (batch, output_size)
    assert h_n.shape == (1, batch, hidden_size)
    assert c_n.shape == (1, batch, hidden_size)
    # bf16 MXU operands with f32 accumulation -> slightly loosened tolerance.
    assert jnp.allclose(pred, ref_pred, atol=3e-2, rtol=3e-2)
    assert jnp.allclose(h_n, ref_h, atol=3e-2, rtol=3e-2)
    assert jnp.allclose(c_n, ref_c, atol=3e-2, rtol=3e-2)

    # --- T > 1 sequence path (exercises the in-kernel recurrence) ---
    seq_len2 = 6
    x_seq = jax.random.normal(keys[9], (seq_len2, batch, input_size), jnp.float32)
    pred2, (h_n2, c_n2) = lstm_decoder_forward(x_seq, h0, c0, packed)
    jax.block_until_ready((pred2, h_n2, c_n2))

    ref_pred2, (ref_h2, ref_c2) = lstm_decoder_reference(
        x_seq, h0, c0, w_ih, w_hh, b_ih, b_hh, w_lin, b_lin)
    assert pred2.shape == (seq_len2, batch, output_size)
    assert jnp.allclose(pred2, ref_pred2, atol=5e-2, rtol=5e-2)
    assert jnp.allclose(h_n2, ref_h2, atol=5e-2, rtol=5e-2)
    assert jnp.allclose(c_n2, ref_c2, atol=5e-2, rtol=5e-2)

    print("KERNEL_OK")
</pallas_src>

<mosaic_0001>
module attributes {stable_mosaic.version = 11 : i64} {
  func.func @lstm_decoder_step_kernel(%arg0: memref<8x128xbf16, #tpu.memory_space<vmem>>, %arg1: memref<128x512xbf16, #tpu.memory_space<vmem>>, %arg2: memref<128x512xbf16, #tpu.memory_space<vmem>>, %arg3: memref<1x512xf32, #tpu.memory_space<vmem>>, %arg4: memref<8x128xf32, #tpu.memory_space<vmem>>, %arg5: memref<8x128xf32, #tpu.memory_space<vmem>>, %arg6: memref<128x128xbf16, #tpu.memory_space<vmem>>, %arg7: memref<1x128xf32, #tpu.memory_space<vmem>>, %arg8: memref<8x128xf32, #tpu.memory_space<vmem>>, %arg9: memref<8x128xf32, #tpu.memory_space<vmem>>, %arg10: memref<8x128xf32, #tpu.memory_space<vmem>>) attributes {dimension_semantics = [], scalar_prefetch = 0 : i64, scratch_operands = 0 : i64, tpu.core_type = #tpu.core_type<tc>} {
    %c0 = arith.constant 0 : index
    %c0_0 = arith.constant 0 : index
    %0 = vector.load %arg0[%c0, %c0_0] : memref<8x128xbf16, #tpu.memory_space<vmem>>, vector<8x128xbf16>
    %c0_1 = arith.constant 0 : index
    %c0_2 = arith.constant 0 : index
    %1 = vector.load %arg1[%c0_1, %c0_2] : memref<128x512xbf16, #tpu.memory_space<vmem>>, vector<128x512xbf16>
    %cst = arith.constant dense<0.000000e+00> : vector<8x512xf32>
    %2 = tpu.matmul %0, %1, %cst {dimension_numbers = #tpu.dot_dimension_numbers<[1], [0], [0], [1], [0, 0, 1, 1], [], []>} : vector<8x128xbf16>, vector<128x512xbf16>, vector<8x512xf32> -> vector<8x512xf32>
    %c0_3 = arith.constant 0 : index
    %c0_4 = arith.constant 0 : index
    %3 = vector.load %arg4[%c0_3, %c0_4] : memref<8x128xf32, #tpu.memory_space<vmem>>, vector<8x128xf32>
    %4 = arith.truncf %3 : vector<8x128xf32> to vector<8x128xbf16>
    %c0_5 = arith.constant 0 : index
    %c0_6 = arith.constant 0 : index
    %5 = vector.load %arg2[%c0_5, %c0_6] : memref<128x512xbf16, #tpu.memory_space<vmem>>, vector<128x512xbf16>
    %cst_7 = arith.constant dense<0.000000e+00> : vector<8x512xf32>
    %6 = tpu.matmul %4, %5, %cst_7 {dimension_numbers = #tpu.dot_dimension_numbers<[1], [0], [0], [1], [0, 0, 1, 1], [], []>} : vector<8x128xbf16>, vector<128x512xbf16>, vector<8x512xf32> -> vector<8x512xf32>
    %7 = arith.addf %2, %6 : vector<8x512xf32>
    %c0_8 = arith.constant 0 : index
    %c0_9 = arith.constant 0 : index
    %8 = vector.load %arg3[%c0_8, %c0_9] : memref<1x512xf32, #tpu.memory_space<vmem>>, vector<1x512xf32>
    %9 = vector.broadcast %8 : vector<1x512xf32> to vector<8x512xf32>
    %10 = arith.addf %7, %9 : vector<8x512xf32>
    %c0_10 = arith.constant 0 : index
    %c0_11 = arith.constant 0 : index
    %11 = vector.load %arg5[%c0_10, %c0_11] : memref<8x128xf32, #tpu.memory_space<vmem>>, vector<8x128xf32>
    %12 = vector.extract_strided_slice %10 {offsets = [0, 0], sizes = [8, 384], strides = [1, 1]} : vector<8x512xf32> to vector<8x384xf32>
    %13 = arith.negf %12 : vector<8x384xf32>
    %14 = math.exp %13 : vector<8x384xf32>
    %cst_12 = arith.constant 1.000000e+00 : f32
    %15 = vector.broadcast %cst_12 : f32 to vector<8x384xf32>
    %16 = arith.addf %15, %14 : vector<8x384xf32>
    %17 = arith.divf %15, %16 : vector<8x384xf32>
    %18 = vector.extract_strided_slice %10 {offsets = [0, 384], sizes = [8, 128], strides = [1, 1]} : vector<8x512xf32> to vector<8x128xf32>
    %19 = math.tanh %18 : vector<8x128xf32>
    %20 = vector.extract_strided_slice %17 {offsets = [0, 128], sizes = [8, 128], strides = [1, 1]} : vector<8x384xf32> to vector<8x128xf32>
    %21 = arith.mulf %20, %11 : vector<8x128xf32>
    %22 = vector.extract_strided_slice %17 {offsets = [0, 0], sizes = [8, 128], strides = [1, 1]} : vector<8x384xf32> to vector<8x128xf32>
    %23 = arith.mulf %22, %19 : vector<8x128xf32>
    %24 = arith.addf %21, %23 : vector<8x128xf32>
    %25 = vector.extract_strided_slice %17 {offsets = [0, 256], sizes = [8, 128], strides = [1, 1]} : vector<8x384xf32> to vector<8x128xf32>
    %26 = math.tanh %24 : vector<8x128xf32>
    %27 = arith.mulf %25, %26 : vector<8x128xf32>
    %c0_13 = arith.constant 0 : index
    %c0_14 = arith.constant 0 : index
    %28 = vector.load %arg9[%c0_13, %c0_14] : memref<8x128xf32, #tpu.memory_space<vmem>>, vector<8x128xf32>
    tpu.vector_store %arg9[%c0_13, %c0_14], %27 {strides = array<i32>} : memref<8x128xf32, #tpu.memory_space<vmem>>, vector<8x128xf32>,
    %c0_15 = arith.constant 0 : index
    %c0_16 = arith.constant 0 : index
    %29 = vector.load %arg10[%c0_15, %c0_16] : memref<8x128xf32, #tpu.memory_space<vmem>>, vector<8x128xf32>
    tpu.vector_store %arg10[%c0_15, %c0_16], %24 {strides = array<i32>} : memref<8x128xf32, #tpu.memory_space<vmem>>, vector<8x128xf32>,
    %30 = arith.truncf %27 : vector<8x128xf32> to vector<8x128xbf16>
    %c0_17 = arith.constant 0 : index
    %c0_18 = arith.constant 0 : index
    %31 = vector.load %arg6[%c0_17, %c0_18] : memref<128x128xbf16, #tpu.memory_space<vmem>>, vector<128x128xbf16>
    %cst_19 = arith.constant dense<0.000000e+00> : vector<8x128xf32>
    %32 = tpu.matmul %30, %31, %cst_19 {dimension_numbers = #tpu.dot_dimension_numbers<[1], [0], [0], [1], [0, 0, 1, 1], [], []>} : vector<8x128xbf16>, vector<128x128xbf16>, vector<8x128xf32> -> vector<8x128xf32>
    %c0_20 = arith.constant 0 : index
    %c0_21 = arith.constant 0 : index
    %33 = vector.load %arg7[%c0_20, %c0_21] : memref<1x128xf32, #tpu.memory_space<vmem>>, vector<1x128xf32>
    %34 = vector.broadcast %33 : vector<1x128xf32> to vector<8x128xf32>
    %35 = arith.addf %32, %34 : vector<8x128xf32>
    %c0_22 = arith.constant 0 : index
    %c0_23 = arith.constant 0 : index
    %36 = vector.load %arg8[%c0_22, %c0_23] : memref<8x128xf32, #tpu.memory_space<vmem>>, vector<8x128xf32>
    tpu.vector_store %arg8[%c0_22, %c0_23], %35 {strides = array<i32>} : memref<8x128xf32, #tpu.memory_space<vmem>>, vector<8x128xf32>,
    return
  }
}

</mosaic_0001>

<bundles_post_ra>
// kernel: tpu_custom_call.1
= control target key start
LH: loop header
LB: loop body
LE: loop exit
PB: predicated region body
PF: predicated region fallthrough
CT: control target
= control target key end

     0   :  { %16 = vsyncpa [#allocation3], 0  ;;  %s1471_s0 = inlined_call_operand.hbm [shape: bf16[8,128], index: 0, kind: input, shape index: {}]   ;;  %s1472_s1 = inlined_call_operand.hbm [shape: bf16[128,512], index: 1, kind: input, shape index: {}]   ;;  %s1473_s2 = inlined_call_operand.hbm [shape: bf16[128,512], index: 2, kind: input, shape index: {}]   ;;  %s1474_s3 = inlined_call_operand.hbm [shape: f32[1,512], index: 3, kind: input, shape index: {}]   ;;  %s1475_s4 = inlined_call_operand.vmem [shape: f32[8,128], index: 4, kind: input, shape index: {}]   ;;  %s1476_s5 = inlined_call_operand.vmem [shape: f32[8,128], index: 5, kind: input, shape index: {}]   ;;  %s1477_s6 = inlined_call_operand.hbm [shape: bf16[128,128], index: 6, kind: input, shape index: {}]   ;;  %s1478_s7 = inlined_call_operand.vmem [shape: f32[1,128], index: 7, kind: input, shape index: {}]   ;;  %s1479_s8 = inlined_call_operand.hbm [shape: f32[8,128], index: 8, kind: output, shape index: {0}]   ;;  %s1480_s9 = inlined_call_operand.hbm [shape: f32[8,128], index: 9, kind: output, shape index: {1}]   ;;  %s1481_s10 = inlined_call_operand.hbm [shape: f32[8,128], index: 10, kind: output, shape index: {2}]  }
   0x1   :  { %17 = vsyncpa [#allocation6], 0 }
   0x2   :  { %18 = vsyncpa [#allocation9], 0 }
   0x3   :  { %19 = vsyncpa [#allocation4], 0 }
   0x4   :  { %20 = vsyncpa [#allocation13], 0  ;;  %s1286_s13 = smov [#allocation5]   ;;  %s1100_s17 = scalar_lea.hbm %s1472_s1, 4096 }
   0x5   :  { %s36_s14 = sshll.u32 %s1286_s13, 4  ;;  %p1101_p0 = scmp.ne.s32.totalorder %s1472_s1, %s1100_s17  ;;  %s37_s14 = int_to_ptr.vmem [resolvable:$true] %s36_s14 }
   0x6   :  { %p1104_p1 = scmp.lt.u32.totalorder %s1100_s17, %s1472_s1 }
   0x8   :  { %p1106_p2 = pnand %p1104_p1, %p1101_p0 }
   0xa   :  { %1109 = shalt.err (!%p1106_p2)
}
   0xb   :  { %s1110_s22 = scalar_lea.vmem %s37_s14, 4096  ;;  %p1115_p4 = scmp.lt.s32.totalorder %s37_s14, %s37_s14 }
   0xc   :  { %p1111_p3 = scmp.ne.s32.totalorder %s37_s14, %s1110_s22  ;;  %p1116_p5 = scmp.lt.s32.totalorder %s1110_s22, %s1110_s22 }
   0xe   :  { %p1117_p6 = por %p1116_p5, %p1115_p4 }
  0x10   :  { %p1118_p7 = pnand %p1117_p6, %p1111_p3 }
  0x12   :  { %1121 = shalt.err (!%p1118_p7)
}
  0x13   :  { %s1287_s23 = smov 256   ;;  %s1288_s24 = smov 16  }
  0x14   :  { %42 = dma.hbm_to_vmem [thread:$0]  %s1472_s1, 4096, %s37_s14, [#allocation6], %s1287_s23, %s1287_s23, %s1288_s24  }
  0x15   :  { %s1289_s27 = smov [#allocation8]   ;;  %s1290_s29 = smov [#allocation2]  }
  0x16   :  { %s61_s28 = sshll.u32 %s1289_s27, 4  ;;  %s27_s30 = sshll.u32 %s1290_s29, 4  ;;  %s62_s28 = int_to_ptr.vmem [resolvable:$true] %s61_s28  ;;  %s28_s30 = int_to_ptr.vmem [resolvable:$true] %s27_s30 }
  0x17   :  { %s1122_s13 = scalar_lea.hbm %s1474_s3, 64 }
  0x18   :  { %p1123_p8 = scmp.ne.s32.totalorder %s1474_s3, %s1122_s13  ;;  %p1126_p9 = scmp.lt.u32.totalorder %s1122_s13, %s1474_s3 }
  0x1a   :  { %p1128_p10 = pnand %p1126_p9, %p1123_p8 }
  0x1c   :  { %1131 = shalt.err (!%p1128_p10)
}
  0x1d   :  { %s1132_s1 = scalar_lea.vmem %s62_s28, 64  ;;  %p1137_p12 = scmp.lt.s32.totalorder %s62_s28, %s62_s28 }
  0x1e   :  { %p1133_p11 = scmp.ne.s32.totalorder %s62_s28, %s1132_s1  ;;  %p1138_p13 = scmp.lt.s32.totalorder %s1132_s1, %s1132_s1 }
  0x20   :  { %p1139_p0 = por %p1138_p13, %p1137_p12 }
  0x22   :  { %p1140_p1 = pnand %p1139_p0, %p1133_p11 }
  0x24   :  { %1143 = shalt.err (!%p1140_p1)
}
  0x25   :  { %64 = dma.hbm_to_vmem [thread:$0]  %s1474_s3, 64, %s62_s28, [#allocation9]  }
  0x26   :  { %s1144_s22 = scalar_lea.hbm %s1471_s0, 64 }
  0x27   :  { %p1145_p2 = scmp.ne.s32.totalorder %s1471_s0, %s1144_s22  ;;  %p1148_p3 = scmp.lt.u32.totalorder %s1144_s22, %s1471_s0 }
  0x29   :  { %p1150_p4 = pnand %p1148_p3, %p1145_p2 }
  0x2b   :  { %1153 = shalt.err (!%p1150_p4)
}
  0x2c   :  { %s1154_s11 = scalar_lea.vmem %s28_s30, 64  ;;  %p1159_p6 = scmp.lt.s32.totalorder %s28_s30, %s28_s30 }
  0x2d   :  { %p1155_p5 = scmp.ne.s32.totalorder %s28_s30, %s1154_s11  ;;  %p1160_p7 = scmp.lt.s32.totalorder %s1154_s11, %s1154_s11 }
  0x2f   :  { %p1161_p8 = por %p1160_p7, %p1159_p6 }
  0x31   :  { %p1162_p9 = pnand %p1161_p8, %p1155_p5 }
  0x33   :  { %1165 = shalt.err (!%p1162_p9)
}
  0x34   :  { %30 = dma.hbm_to_vmem [thread:$0]  %s1471_s0, 64, %s28_s30, [#allocation3]  }
  0x35   :  { %s1291_s12 = smov [#allocation7]   ;;  %s1292_s15 = smov [#allocation10]  }
  0x36   :  { %s48_s13 = sshll.u32 %s1291_s12, 4  ;;  %s74_s16 = sshll.u32 %s1292_s15, 4  ;;  %s49_s13 = int_to_ptr.vmem [resolvable:$true] %s48_s13  ;;  %s75_s16 = int_to_ptr.vmem [resolvable:$true] %s74_s16 }
  0x37   :  { %s1166_s1 = scalar_lea.hbm %s1473_s2, 4096 }
  0x38   :  { %p1167_p10 = scmp.ne.s32.totalorder %s1473_s2, %s1166_s1  ;;  %p1170_p11 = scmp.lt.u32.totalorder %s1166_s1, %s1473_s2 }
  0x3a   :  { %p1172_p12 = pnand %p1170_p11, %p1167_p10 }
  0x3c   :  { %1175 = shalt.err (!%p1172_p12)
}
  0x3d   :  { %s1176_s0 = scalar_lea.vmem %s49_s13, 4096  ;;  %p1181_p0 = scmp.lt.s32.totalorder %s49_s13, %s49_s13 }
  0x3e   :  { %p1177_p13 = scmp.ne.s32.totalorder %s49_s13, %s1176_s0  ;;  %p1182_p1 = scmp.lt.s32.totalorder %s1176_s0, %s1176_s0 }
  0x40   :  { %p1183_p2 = por %p1182_p1, %p1181_p0 }
  0x42   :  { %p1184_p3 = pnand %p1183_p2, %p1177_p13 }
  0x44   :  { %1187 = shalt.err (!%p1184_p3)
}
  0x45   :  { %54 = dma.hbm_to_vmem [thread:$0]  %s1473_s2, 4096, %s49_s13, [#allocation6], %s1287_s23, %s1287_s23, %s1288_s24  }
  0x46   :  { %s1188_s27 = scalar_lea.hbm %s1477_s6, 1024 }
  0x47   :  { %p1189_p4 = scmp.ne.s32.totalorder %s1477_s6, %s1188_s27  ;;  %p1192_p5 = scmp.lt.u32.totalorder %s1188_s27, %s1477_s6 }
  0x49   :  { %p1194_p6 = pnand %p1192_p5, %p1189_p4 }
  0x4b   :  { %1197 = shalt.err (!%p1194_p6)
}
  0x4c   :  { %s1198_s12 = scalar_lea.vmem %s75_s16, 1024  ;;  %p1203_p8 = scmp.lt.s32.totalorder %s75_s16, %s75_s16 }
  0x4d   :  { %p1199_p7 = scmp.ne.s32.totalorder %s75_s16, %s1198_s12  ;;  %p1204_p9 = scmp.lt.s32.totalorder %s1198_s12, %s1198_s12 }
  0x4f   :  { %p1205_p10 = por %p1204_p9, %p1203_p8 }
  0x51   :  { %p1206_p11 = pnand %p1205_p10, %p1199_p7 }
  0x53   :  { %1209 = shalt.err (!%p1206_p11)
}
  0x54   :  { %s1293_s2 = smov 64   ;;  %s1294_s23 = smov 4  }
  0x55   :  { %80 = dma.hbm_to_vmem [thread:$0]  %s1477_s6, 1024, %s75_s16, [#allocation9], %s1293_s2, %s1293_s2, %s1294_s23  }
  0x56   :  { %1276 = dma.done.wait [#allocation3], 64  }
  0x57   :  { %1277 = vsyncadd [#allocation3], 4294967232 }
  0x58   :  { %1278 = dma.done.wait [#allocation6], 8192  }
  0x59   :  { %1279 = vsyncadd [#allocation6], 4294959104 }
  0x5a   :  { %1280 = dma.done.wait [#allocation9], 1088  }
  0x5b   :  { %1281 = vsyncadd [#allocation9], 4294966208  ;;  %v1295_v0 = vmov 0   ;;  %v980_v1 = vld [vmem:[#allocation7 + $0x4] ss:$16 sps:$4 sm:$0xff]   ;;  %v132_v33 = vld [vmem:[%s1475_s4] sm:$0xff] }
  0x5c   :  { %358 = vmatprep.mubr.bf16.mxu0 %v1295_v0  ;;  %399 = vmatprep.mubr.bf16.mxu1 %v1295_v0  ;;  %v982_v2 = vld [vmem:[#allocation7 + $0xc] ss:$16 sps:$4 sm:$0xff]   ;;  %v984_v3 = vld [vmem:[#allocation7] ss:$16 sps:$4 sm:$0xff]   ;;  %v985_v4 = vld [vmem:[#allocation7 + $0x8] ss:$16 sps:$4 sm:$0xff]   ;;  %v133_v36 = vpack.c.bf16 %v132_v33, %v132_v33 }
  0x5d   :  { %326 = vmatprep.subr.bf16.mxu0 %v980_v1  ;;  %367 = vmatprep.subr.bf16.mxu1 %v982_v2  ;;  %v986_v5 = vld [vmem:[#allocation7 + $0x24] ss:$16 sps:$4 sm:$0xff]   ;;  %v988_v6 = vld [vmem:[#allocation7 + $0x2c] ss:$16 sps:$4 sm:$0xff]   ;;  %v990_v7 = vld [vmem:[#allocation7 + $0x20] ss:$16 sps:$4 sm:$0xff]  }
  0x5e   :  { %327 = vmatpush1.bf16.msra.mxu0 %v984_v3  ;;  %368 = vmatpush1.bf16.msra.mxu1 %v985_v4  ;;  %v991_v8 = vld [vmem:[#allocation7 + $0x28] ss:$16 sps:$4 sm:$0xff]   ;;  %v992_v9 = vld [vmem:[#allocation7 + $0x44] ss:$16 sps:$4 sm:$0xff]   ;;  %v994_v10 = vld [vmem:[#allocation7 + $0x4c] ss:$16 sps:$4 sm:$0xff]  }
  0x5f   :  { %328 = vmatprep.subr.bf16.mxu0 %v986_v5  ;;  %369 = vmatprep.subr.bf16.mxu1 %v988_v6  ;;  %v996_v11 = vld [vmem:[#allocation7 + $0x40] ss:$16 sps:$4 sm:$0xff]   ;;  %v997_v12 = vld [vmem:[#allocation7 + $0x48] ss:$16 sps:$4 sm:$0xff]   ;;  %v998_v13 = vld [vmem:[#allocation7 + $0x64] ss:$16 sps:$4 sm:$0xff]  }
  0x60   :  { %v1000_v14 = vld [vmem:[#allocation7 + $0x6c] ss:$16 sps:$4 sm:$0xff]   ;;  %v1002_v15 = vld [vmem:[#allocation7 + $0x60] ss:$16 sps:$4 sm:$0xff]   ;;  %v1003_v16 = vld [vmem:[#allocation7 + $0x68] ss:$16 sps:$4 sm:$0xff]  }
  0x61   :  { %v1004_v17 = vld [vmem:[#allocation7 + $0x84] ss:$16 sps:$4 sm:$0xff]   ;;  %v1006_v18 = vld [vmem:[#allocation7 + $0x8c] ss:$16 sps:$4 sm:$0xff]   ;;  %v1008_v19 = vld [vmem:[#allocation7 + $0x80] ss:$16 sps:$4 sm:$0xff]  }
  0x62   :  { %329 = vmatpush1.bf16.msra.mxu0 %v990_v7  ;;  %370 = vmatpush1.bf16.msra.mxu1 %v991_v8  ;;  %v1009_v20 = vld [vmem:[#allocation7 + $0x88] ss:$16 sps:$4 sm:$0xff]   ;;  %v1010_v21 = vld [vmem:[#allocation7 + $0xa4] ss:$16 sps:$4 sm:$0xff]   ;;  %v1012_v22 = vld [vmem:[#allocation7 + $0xac] ss:$16 sps:$4 sm:$0xff]  }
  0x63   :  { %330 = vmatprep.subr.bf16.mxu0 %v992_v9  ;;  %371 = vmatprep.subr.bf16.mxu1 %v994_v10  ;;  %v1014_v23 = vld [vmem:[#allocation7 + $0xa0] ss:$16 sps:$4 sm:$0xff]   ;;  %v1015_v24 = vld [vmem:[#allocation7 + $0xa8] ss:$16 sps:$4 sm:$0xff]   ;;  %v1016_v25 = vld [vmem:[#allocation7 + $0xc4] ss:$16 sps:$4 sm:$0xff]  }
  0x64   :  { %v1018_v26 = vld [vmem:[#allocation7 + $0xcc] ss:$16 sps:$4 sm:$0xff]   ;;  %v1020_v27 = vld [vmem:[#allocation7 + $0xc0] ss:$16 sps:$4 sm:$0xff]   ;;  %v1021_v28 = vld [vmem:[#allocation7 + $0xc8] ss:$16 sps:$4 sm:$0xff]  }
  0x65   :  { %v1022_v29 = vld [vmem:[#allocation7 + $0xe4] ss:$16 sps:$4 sm:$0xff]   ;;  %v1024_v30 = vld [vmem:[#allocation7 + $0xec] ss:$16 sps:$4 sm:$0xff]   ;;  %v1026_v31 = vld [vmem:[#allocation7 + $0xe0] ss:$16 sps:$4 sm:$0xff]  }
  0x66   :  { %331 = vmatpush1.bf16.msra.mxu0 %v996_v11  ;;  %372 = vmatpush1.bf16.msra.mxu1 %v997_v12  ;;  %v1027_v32 = vld [vmem:[#allocation7 + $0xe8] ss:$16 sps:$4 sm:$0xff]   ;;  %v1030_v34 = vld [vmem:[#allocation5 + $0x4] ss:$16 sps:$4 sm:$0xff]   ;;  %v1033_v35 = vld [vmem:[#allocation5 + $0xc] ss:$16 sps:$4 sm:$0xff]  }
  0x67   :  { %332 = vmatprep.subr.bf16.mxu0 %v998_v13  ;;  %373 = vmatprep.subr.bf16.mxu1 %v1000_v14  ;;  %v1028_v37 = vld [vmem:[#allocation5] ss:$16 sps:$4 sm:$0xff]   ;;  %v1031_v38 = vld [vmem:[#allocation5 + $0x8] ss:$16 sps:$4 sm:$0xff]   ;;  %v1036_v39 = vld [vmem:[#allocation5 + $0x24] ss:$16 sps:$4 sm:$0xff]  }
  0x68   :  { %v1039_v40 = vld [vmem:[#allocation5 + $0x2c] ss:$16 sps:$4 sm:$0xff]   ;;  %v1034_v41 = vld [vmem:[#allocation5 + $0x20] ss:$16 sps:$4 sm:$0xff]   ;;  %v1037_v42 = vld [vmem:[#allocation5 + $0x28] ss:$16 sps:$4 sm:$0xff]  }
  0x69   :  { %v1042_v43 = vld [vmem:[#allocation5 + $0x44] ss:$16 sps:$4 sm:$0xff]   ;;  %v1045_v44 = vld [vmem:[#allocation5 + $0x4c] ss:$16 sps:$4 sm:$0xff]   ;;  %v1040_v45 = vld [vmem:[#allocation5 + $0x40] ss:$16 sps:$4 sm:$0xff]  }
  0x6a   :  { %333 = vmatpush1.bf16.msra.mxu0 %v1002_v15  ;;  %374 = vmatpush1.bf16.msra.mxu1 %v1003_v16  ;;  %v1043_v46 = vld [vmem:[#allocation5 + $0x48] ss:$16 sps:$4 sm:$0xff]   ;;  %v1048_v47 = vld [vmem:[#allocation5 + $0x64] ss:$16 sps:$4 sm:$0xff]   ;;  %v1051_v48 = vld [vmem:[#allocation5 + $0x6c] ss:$16 sps:$4 sm:$0xff]  }
  0x6b   :  { %334 = vmatprep.subr.bf16.mxu0 %v1004_v17  ;;  %375 = vmatprep.subr.bf16.mxu1 %v1006_v18  ;;  %v1046_v49 = vld [vmem:[#allocation5 + $0x60] ss:$16 sps:$4 sm:$0xff]   ;;  %v1049_v50 = vld [vmem:[#allocation5 + $0x68] ss:$16 sps:$4 sm:$0xff]   ;;  %v1054_v51 = vld [vmem:[#allocation5 + $0x84] ss:$16 sps:$4 sm:$0xff]  }
  0x6c   :  { %v1057_v52 = vld [vmem:[#allocation5 + $0x8c] ss:$16 sps:$4 sm:$0xff]   ;;  %v1052_v53 = vld [vmem:[#allocation5 + $0x80] ss:$16 sps:$4 sm:$0xff]   ;;  %v1055_v54 = vld [vmem:[#allocation5 + $0x88] ss:$16 sps:$4 sm:$0xff]  }
  0x6d   :  { %v1060_v55 = vld [vmem:[#allocation5 + $0xa4] ss:$16 sps:$4 sm:$0xff]   ;;  %v1063_v56 = vld [vmem:[#allocation5 + $0xac] ss:$16 sps:$4 sm:$0xff]   ;;  %v1058_v57 = vld [vmem:[#allocation5 + $0xa0] ss:$16 sps:$4 sm:$0xff]  }
  0x6e   :  { %335 = vmatpush1.bf16.msra.mxu0 %v1008_v19  ;;  %376 = vmatpush1.bf16.msra.mxu1 %v1009_v20  ;;  %v1061_v58 = vld [vmem:[#allocation5 + $0xa8] ss:$16 sps:$4 sm:$0xff]   ;;  %v1066_v59 = vld [vmem:[#allocation5 + $0xc4] ss:$16 sps:$4 sm:$0xff]   ;;  %v1069_v60 = vld [vmem:[#allocation5 + $0xcc] ss:$16 sps:$4 sm:$0xff]  }
  0x6f   :  { %336 = vmatprep.subr.bf16.mxu0 %v1010_v21  ;;  %377 = vmatprep.subr.bf16.mxu1 %v1012_v22  ;;  %v1064_v61 = vld [vmem:[#allocation5 + $0xc0] ss:$16 sps:$4 sm:$0xff]   ;;  %v1067_v62 = vld [vmem:[#allocation5 + $0xc8] ss:$16 sps:$4 sm:$0xff]   ;;  %v1072_v63 = vld [vmem:[#allocation5 + $0xe4] ss:$16 sps:$4 sm:$0xff]   ;;  %v652_v21 = vlaneseq }
  0x70   :  { %v1070_v1 = vld [vmem:[#allocation5 + $0xe0] ss:$16 sps:$4 sm:$0xff]   ;;  %v1073_v2 = vld [vmem:[#allocation5 + $0xe8] ss:$16 sps:$4 sm:$0xff]   ;;  %v99_v3 = vld [vmem:[#allocation2] sm:$0xf] }
  0x71   :  { %v1076_v4 = vld [vmem:[#allocation10] sm:$0xff]   ;;  %v1296_v5 = vmov 0.0   ;;  %v1077_v6 = vld [vmem:[#allocation10 + $0x8] sm:$0xff]   ;;  %v1078_v7 = vld [vmem:[#allocation10 + $0x10] sm:$0xff]   ;;  %vm1297_vm0 = vmmov 0   ;;  %v653_v22 = vshrl.u32 %v652_v21, 7 }
  0x72   :  { %337 = vmatpush1.bf16.msra.mxu0 %v1014_v23  ;;  %378 = vmatpush1.bf16.msra.mxu1 %v1015_v24  ;;  %v1079_v8 = vld [vmem:[#allocation10 + $0x18] sm:$0xff]   ;;  %v1080_v9 = vld [vmem:[#allocation10 + $0x20] sm:$0xff]   ;;  %v1081_v10 = vld [vmem:[#allocation10 + $0x28] sm:$0xff]   ;;  %s1298_s17 = smov [#allocation12]  }
  0x73   :  { %338 = vmatprep.subr.bf16.mxu0 %v1016_v25  ;;  %379 = vmatprep.subr.bf16.mxu1 %v1018_v26  ;;  %v1082_v11 = vld [vmem:[#allocation10 + $0x30] sm:$0xff]   ;;  %v1083_v12 = vld [vmem:[#allocation10 + $0x38] sm:$0xff]   ;;  %v654_v23 = vsub.s32 0, %v653_v22  ;;  %v658_v25 = vsub.s32 1, %v653_v22  ;;  %s832_s18 = sshll.u32 %s1298_s17, 4  ;;  %s833_s18 = int_to_ptr.vmem [resolvable:$true] %s832_s18 }
  0x74   :  { %v650_v24 = vld [vmem:[#allocation8] sm:$0xf]  ;;  %s1210_s1 = scalar_lea.vmem %s833_s18, 128  ;;  %p1215_p13 = scmp.lt.s32.totalorder %s833_s18, %s833_s18 }
  0x75   :  { %v655_v26 = vrot.slane %v650_v24, %v654_v23  ;;  %p1211_p12 = scmp.ne.s32.totalorder %s833_s18, %s1210_s1  ;;  %p1216_p0 = scmp.lt.s32.totalorder %s1210_s1, %s1210_s1 }
  0x76   :  { %339 = vmatpush1.bf16.msra.mxu0 %v1020_v27  ;;  %380 = vmatpush1.bf16.msra.mxu1 %v1021_v28 }
  0x77   :  { %340 = vmatprep.subr.bf16.mxu0 %v1022_v29  ;;  %381 = vmatprep.subr.bf16.mxu1 %v1024_v30  ;;  %v659_v29 = vrot.slane %v650_v24, %v658_v25  ;;  %p1217_p1 = por %p1216_p0, %p1215_p13 }
  0x79   :  { %p1218_p2 = pnand %p1217_p1, %p1211_p12 }
  0x7a   :  { %341 = vmatpush1.bf16.msra.mxu0 %v1026_v31  ;;  %382 = vmatpush1.bf16.msra.mxu1 %v1027_v32 }
  0x7b   :  { %568 = vmatprep.subr.bf16.mxu0 %v1030_v34  ;;  %609 = vmatprep.subr.bf16.mxu1 %v1033_v35 }
  0x7d   :  { %359 = vmatmul.mubr.bf16.vlgmr.msra.gmra.mrb[0].mxu0 %v133_v36  ;;  %400 = vmatmul.mubr.bf16.vlgmr.msra.gmra.mrb[0].mxu1 %v133_v36 }
  0x7e   :  { %569 = vmatpush1.bf16.msra.mxu0 %v1028_v37  ;;  %610 = vmatpush1.bf16.msra.mxu1 %v1031_v38 }
  0x7f   :  { %570 = vmatprep.subr.bf16.mxu0 %v1036_v39  ;;  %611 = vmatprep.subr.bf16.mxu1 %v1039_v40  ;;  %v662_v39 = vsub.s32 2, %v653_v22 }
  0x80   :  { %600 = vmatprep.mubr.bf16.mxu0 %v1295_v0  ;;  %641 = vmatprep.mubr.bf16.mxu1 %v1295_v0  ;;  %v1075_v0 = vld [vmem:[#allocation5 + $0xec] ss:$16 sps:$4 sm:$0xff]  }
  0x82   :  { %571 = vmatpush1.bf16.msra.mxu0 %v1034_v41  ;;  %612 = vmatpush1.bf16.msra.mxu1 %v1037_v42 }
  0x83   :  { %572 = vmatprep.subr.bf16.mxu0 %v1042_v43  ;;  %613 = vmatprep.subr.bf16.mxu1 %v1045_v44 }
  0x86   :  { %573 = vmatpush1.bf16.msra.mxu0 %v1040_v45  ;;  %614 = vmatpush1.bf16.msra.mxu1 %v1043_v46  ;;  %v666_v45 = vsub.s32 3, %v653_v22  ;;  %v663_v46 = vrot.slane %v650_v24, %v662_v39 }
  0x87   :  { %574 = vmatprep.subr.bf16.mxu0 %v1048_v47  ;;  %615 = vmatprep.subr.bf16.mxu1 %v1051_v48 }
  0x88   :  { %v667_v47 = vrot.slane %v650_v24, %v666_v45 }
  0x8a   :  { %575 = vmatpush1.bf16.msra.mxu0 %v1046_v49  ;;  %616 = vmatpush1.bf16.msra.mxu1 %v1049_v50 }
  0x8b   :  { %576 = vmatprep.subr.bf16.mxu0 %v1054_v51  ;;  %617 = vmatprep.subr.bf16.mxu1 %v1057_v52 }
  0x8e   :  { %577 = vmatpush1.bf16.msra.mxu0 %v1052_v53  ;;  %618 = vmatpush1.bf16.msra.mxu1 %v1055_v54 }
  0x8f   :  { %578 = vmatprep.subr.bf16.mxu0 %v1060_v55  ;;  %619 = vmatprep.subr.bf16.mxu1 %v1063_v56 }
  0x92   :  { %579 = vmatpush1.bf16.msra.mxu0 %v1058_v57  ;;  %620 = vmatpush1.bf16.msra.mxu1 %v1061_v58  ;;  %v676_v58 = vld [vmem:[%s1476_s5] sm:$0xff] }
  0x93   :  { %580 = vmatprep.subr.bf16.mxu0 %v1066_v59  ;;  %621 = vmatprep.subr.bf16.mxu1 %v1069_v60 }
  0x96   :  { %581 = vmatpush1.bf16.msra.mxu0 %v1064_v61  ;;  %622 = vmatpush1.bf16.msra.mxu1 %v1067_v62 }
  0x97   :  { %582 = vmatprep.subr.bf16.mxu0 %v1072_v63  ;;  %623 = vmatprep.subr.bf16.mxu1 %v1075_v0 }
  0x9a   :  { %583 = vmatpush1.bf16.msra.mxu0 %v1070_v1  ;;  %624 = vmatpush1.bf16.msra.mxu1 %v1073_v2 }
  0x9b   :  { %945 = vmatprep.subr.bf16.mxu0 %v1296_v5 }
  0x9d   :  { %601 = vmatmul.mubr.bf16.vlgmr.msra.gmra.mrb[4].mxu0 %v99_v3  ;;  %642 = vmatmul.mubr.bf16.vlgmr.msra.gmra.mrb[4].mxu1 %v99_v3 }
  0x9e   :  { %946 = vmatpush3.bf16.msra.mxu0 %v1076_v4  ;;  %961 = vmatprep.mubr.msk.bf16.mxu0 %vm1297_vm0, %v1296_v5 }
  0x9f   :  { %947 = vmatprep.subr.bf16.mxu0 %v1296_v5 }
  0xa2   :  { %948 = vmatpush3.bf16.msra.mxu0 %v1077_v6 }
  0xa3   :  { %949 = vmatprep.subr.bf16.mxu0 %v1296_v5 }
  0xa6   :  { %950 = vmatpush3.bf16.msra.mxu0 %v1078_v7 }
  0xa7   :  { %951 = vmatprep.subr.bf16.mxu0 %v1296_v5 }
  0xaa   :  { %952 = vmatpush3.bf16.msra.mxu0 %v1079_v8 }
  0xab   :  { %953 = vmatprep.subr.bf16.mxu0 %v1296_v5 }
  0xae   :  { %954 = vmatpush3.bf16.msra.mxu0 %v1080_v9 }
  0xaf   :  { %955 = vmatprep.subr.bf16.mxu0 %v1296_v5 }
  0xb2   :  { %956 = vmatpush3.bf16.msra.mxu0 %v1081_v10 }
  0xb3   :  { %957 = vmatprep.subr.bf16.mxu0 %v1296_v5 }
  0xb6   :  { %958 = vmatpush3.bf16.msra.mxu0 %v1082_v11 }
  0xb7   :  { %959 = vmatprep.subr.bf16.mxu0 %v1296_v5 }
  0xba   :  { %960 = vmatpush3.bf16.msra.mxu0 %v1083_v12 }
 0x150   :  { %v360_v13 = vpop.f32.mrb[0].mxu0  ;;  %v401_v14 = vpop.f32.mrb[0].mxu1 }
 0x151   :  { %v362_v15 = vpop.f32.mrb[1].mxu0  ;;  %v403_v16 = vpop.f32.mrb[1].mxu1 }
 0x152   :  { %v364_v17 = vpop.f32.mrb[2].mxu0  ;;  %v405_v18 = vpop.f32.mrb[2].mxu1 }
 0x153   :  { %v365_v19 = vpop.f32.mrb[3].mxu0  ;;  %v406_v20 = vpop.f32.mrb[3].mxu1 }
 0x170   :  { %v602_v27 = vpop.f32.mrb[4].mxu0  ;;  %v643_v28 = vpop.f32.mrb[4].mxu1 }
 0x171   :  { %v603_v30 = vadd.f32 %v602_v27, %v360_v13  ;;  %v644_v31 = vadd.f32 %v643_v28, %v401_v14  ;;  %v604_v32 = vpop.f32.mrb[5].mxu0  ;;  %v645_v33 = vpop.f32.mrb[5].mxu1 }
 0x172   :  { %v605_v34 = vadd.f32 %v604_v32, %v362_v15  ;;  %v646_v35 = vadd.f32 %v645_v33, %v403_v16  ;;  %v606_v36 = vpop.f32.mrb[6].mxu0  ;;  %v647_v37 = vpop.f32.mrb[6].mxu1 }
 0x173   :  { %v672_v38 = vadd.f32 %v655_v26, %v603_v30  ;;  %v607_v40 = vpop.f32.mrb[7].mxu0  ;;  %v648_v41 = vpop.f32.mrb[7].mxu1  ;;  %v674_v48 = vadd.f32 %v663_v46, %v644_v31 }
 0x174   :  { %v673_v42 = vadd.f32 %v659_v29, %v605_v34  ;;  %v675_v49 = vadd.f32 %v667_v47, %v646_v35 }
 0x175   :  { %v924_v43 = vmul.f32 -1.442695, %v672_v38  ;;  %v926_v50 = vmul.f32 -1.442695, %v674_v48 }
 0x176   :  { %v925_v44 = vmul.f32 -1.442695, %v673_v42 }
 0x177   :  { %1084 = vpow2.f32 %v924_v43 }
 0x178   :  { %1086 = vpow2.f32 %v925_v44 }
 0x179   :  { %1088 = vtanh.f32 %v675_v49 }
 0x17a   :  { %1090 = vpow2.f32 %v926_v50 }
 0x181   :  { %v1085_v51 = vpop.eup %1084 }
 0x182   :  { %v686_v52 = vadd.f32 1.0, %v1085_v51  ;;  %v1087_v53 = vpop.eup %1086 }
 0x183   :  { %v687_v54 = vadd.f32 1.0, %v1087_v53  ;;  %v1089_v55 = vpop.eup %1088 }
 0x184   :  { %1092 = vrcp.f32 %v686_v52  ;;  %v1091_v56 = vpop.eup %1090 }
 0x185   :  { %1094 = vrcp.f32 %v687_v54  ;;  %v688_v61 = vadd.f32 1.0, %v1091_v56 }
 0x187   :  { %1096 = vrcp.f32 %v688_v61 }
 0x18e   :  { %v1093_v57 = vpop.eup %1092 }
 0x18f   :  { %v697_v59 = vmul.f32 %v1093_v57, %v1089_v55  ;;  %v1095_v60 = vpop.eup %1094 }
 0x190   :  { %v696_v62 = vmul.f32 %v1095_v60, %v676_v58 }
 0x191   :  { %v1097_v0 = vpop.eup %1096 }
 0x192   :  { %v698_v63 = vadd.f32 %v697_v59, %v696_v62 }
 0x194   :  { %1098 = vtanh.f32 %v698_v63  ;;  %702 = vst [vmem:[#allocation14] sm:$0xff] %v698_v63 }
 0x19e   :  { %v1099_v1 = vpop.eup %1098 }
 0x19f   :  { %v700_v2 = vmul.f32 %v1099_v1, %v1097_v0 }
 0x1a1   :  { %v703_v3 = vpack.c.bf16 %v700_v2, %v700_v2  ;;  %701 = vst [vmem:[#allocation12] sm:$0xff] %v700_v2 }
 0x1a3   :  { %962 = vmatmul.mubr.bf16.vlgmr.msra.gmra.mrb[8].mxu0 %v703_v3 }
 0x1a4   :  { %1221 = shalt.err (!%p1218_p2)
}
 0x1a5   :  { %s1222_s19 = scalar_lea.hbm %s1480_s9, 128 }
 0x1a6   :  { %p1223_p3 = scmp.ne.s32.totalorder %s1480_s9, %s1222_s19  ;;  %p1226_p4 = scmp.lt.u32.totalorder %s1222_s19, %s1480_s9 }
 0x1a8   :  { %p1228_p5 = pnand %p1226_p4, %p1223_p3 }
 0x1aa   :  { %1231 = shalt.err (!%p1228_p5)
}
 0x1ab   :  { %835 = dma.vmem_to_hbm [thread:$0]  %s833_s18, 128, %s1480_s9, [#allocation13]  }
 0x1ac   :  { %s1299_s26 = smov [#allocation14]  }
 0x1ad   :  { %s842_s27 = sshll.u32 %s1299_s26, 4  ;;  %s843_s27 = int_to_ptr.vmem [resolvable:$true] %s842_s27 }
 0x1ae   :  { %s1232_s29 = scalar_lea.vmem %s843_s27, 128  ;;  %p1237_p7 = scmp.lt.s32.totalorder %s843_s27, %s843_s27 }
 0x1af   :  { %p1233_p6 = scmp.ne.s32.totalorder %s843_s27, %s1232_s29  ;;  %p1238_p8 = scmp.lt.s32.totalorder %s1232_s29, %s1232_s29 }
 0x1b1   :  { %p1239_p9 = por %p1238_p8, %p1237_p7 }
 0x1b3   :  { %p1240_p10 = pnand %p1239_p9, %p1233_p6 }
 0x1b5   :  { %1243 = shalt.err (!%p1240_p10)
}
 0x1b6   :  { %s1244_s28 = scalar_lea.hbm %s1481_s10, 128 }
 0x1b7   :  { %p1245_p11 = scmp.ne.s32.totalorder %s1481_s10, %s1244_s28  ;;  %p1248_p12 = scmp.lt.u32.totalorder %s1244_s28, %s1481_s10 }
 0x1b9   :  { %p1250_p13 = pnand %p1248_p12, %p1245_p11 }
 0x1bb   :  { %1253 = shalt.err (!%p1250_p13)
}
 0x1bc   :  { %845 = dma.vmem_to_hbm [thread:$0]  %s843_s27, 128, %s1481_s10, [#allocation13]   ;;  %v927_v4 = vld [vmem:[%s1478_s7] ss:$0 sm:$0xff] }
 0x1bd   :  { %s1300_s4 = smov [#allocation11]  }
 0x1be   :  { %s822_s16 = sshll.u32 %s1300_s4, 4  ;;  %s823_s16 = int_to_ptr.vmem [resolvable:$true] %s822_s16 }
 0x1bf   :  { %s1254_s17 = scalar_lea.vmem %s823_s16, 128  ;;  %p1259_p1 = scmp.lt.s32.totalorder %s823_s16, %s823_s16 }
 0x1c0   :  { %p1255_p0 = scmp.ne.s32.totalorder %s823_s16, %s1254_s17  ;;  %p1260_p2 = scmp.lt.s32.totalorder %s1254_s17, %s1254_s17 }
 0x1c2   :  { %p1261_p3 = por %p1260_p2, %p1259_p1 }
 0x1c4   :  { %p1262_p4 = pnand %p1261_p3, %p1255_p0 }
 0x276   :  { %v809_v5 = vpop.f32.mrb[8].mxu0 }
 0x277   :  { %v810_v6 = vadd.f32 %v927_v4, %v809_v5  ;;  %v963_v7 = vpop.f32.mrb[9].mxu0 }
 0x278   :  { %v812_v8 = vpop.f32.mrb[10].mxu0 }
 0x279   :  { %815 = vst [vmem:[#allocation11] sm:$0xff] %v810_v6  ;;  %v964_v9 = vpop.f32.mrb[11].mxu0 }
 0x27a   :  { %1265 = shalt.err (!%p1262_p4)
}
 0x27b   :  { %s1266_s7 = scalar_lea.hbm %s1479_s8, 128 }
 0x27c   :  { %p1267_p5 = scmp.ne.s32.totalorder %s1479_s8, %s1266_s7  ;;  %p1270_p6 = scmp.lt.u32.totalorder %s1266_s7, %s1479_s8 }
 0x27e   :  { %p1272_p7 = pnand %p1270_p6, %p1267_p5 }
 0x280   :  { %1275 = shalt.err (!%p1272_p7)
}
 0x281   :  { %825 = dma.vmem_to_hbm [thread:$0]  %s823_s16, 128, %s1479_s8, [#allocation4]  }
 0x282   :  { %1282 = dma.done.wait [#allocation4], 128  }
 0x283   :  { %1283 = vsyncadd [#allocation4], 4294967168 }
 0x284   :  { %1284 = dma.done.wait [#allocation13], 256  }
 0x285   :  { %1285 = vsyncadd [#allocation13], 4294967040 }
 0x286   :  { %855 = vsyncpa [#allocation3], 1 }
 0x287   :  { %856 = vsyncpa [#allocation6], 1 }
 0x288   :  { %857 = vsyncpa [#allocation9], 1 }
 0x289   :  { %858 = vsyncpa [#allocation4], 1 }
 0x28a   :  { %859 = vsyncpa [#allocation13], 1 }

</bundles_post_ra>
